<compile_context>
chip_gen: v6e
topology: v6e:2x2x1
jax: 0.10.0
libtpu: 0.0.40
codegen_flags: <defaults>
</compile_context>

<pallas_src>
import jax
import jax.numpy as jnp
import numpy as np
from jax.experimental import pallas as pl
from jax.experimental.pallas import tpu as pltpu


def _folded_kernel(q_ref, p_ref, wq_ref, wp_ref, out_ref):
    """Per batch-tile:  out[L, TB] = Wq[L,D] . q[TB,D]^T + Wp[L,D] . p[TB,D]^T.

    Contraction is over the feature (lane) axis of both operands, which keeps
    the batch dimension on the lane axis of the result -> lane-dense stores.
    Input tiles are cast to f32 in-register so callers may stream bf16
    embeddings (half the HBM bytes) while keeping f32 weights / accumulation.
    """
    contract = (((1,), (1,)), ((), ()))  # contract last dim of lhs with last dim of rhs
    q = q_ref[...].astype(jnp.float32)
    p = p_ref[...].astype(jnp.float32)
    acc = jax.lax.dot_general(wq_ref[...], q, contract,
                              preferred_element_type=jnp.float32)
    acc = acc + jax.lax.dot_general(wp_ref[...], p, contract,
                                    preferred_element_type=jnp.float32)
    out_ref[...] = acc.astype(out_ref.dtype)


def fold_params(w1, b1, w2, b2):
    """Fold Linear(2D->H) followed by Linear(H->L) (no activation) into one layer.

    w1: [2D, H], b1: [H], w2: [H, L], b2: [L]   (x @ W + b convention).
    Returns (wq_row [L, D], wp_row [L, D], b_eff [L]).
    Valid for eval mode only (identity dropout, no activation between layers).
    Call once per model; reuse the outputs for every forward pass.
    """
    two_d, _ = w1.shape
    D = two_d // 2
    hi = jax.lax.Precision.HIGHEST
    w_eff = jnp.dot(w1, w2, precision=hi)            # [2D, L]
    b_eff = jnp.dot(b1, w2, precision=hi) + b2       # [L]
    wq_row = w_eff[:D].T                             # [L, D]  (query half)
    wp_row = w_eff[D:].T                             # [L, D]  (product half)
    return wq_row, wp_row, b_eff


def _choose_tb(B, block_b):
    """Pick the batch-tile size.

    Small batches (< 256 rows) use a single full-batch tile (full-dim block, no
    (8,128) alignment constraint).  Larger batches use 128-aligned tiles capped
    so the grid has at least 2 steps -> v7x's second TensorCore gets work
    (no-op on single-TC v5e/v6e).
    """
    if B < 256:
        return B
    tb = min(block_b, (B // 2 // 128) * 128)
    return max(tb, 128)


def folded_forward(query_emb, product_emb, wq_row, wp_row, b_eff, *, block_b=2048):
    """Runs the Pallas kernel. Returns logits laid out as [L, B] (lane-dense)."""
    B, D = query_emb.shape
    L = wq_row.shape[0]

    TB = _choose_tb(B, block_b)
    nb = pl.cdiv(B, TB)

    in_itemsize = jnp.dtype(query_emb.dtype).itemsize
    # Double-buffered (TB, D) query + product blocks dominate the working set;
    # weights/output tiles are a few tens of KiB.  Add headroom and set the
    # scoped-VMEM limit explicitly so large TB works regardless of the
    # generation's default (16 MiB on v5e, 32 MiB on v6e/v7x) while staying
    # far below v7x's 64 MiB physical VMEM.
    vmem_limit = int(2 * 2 * TB * D * in_itemsize + (8 << 20))

    cost = pl.CostEstimate(
        flops=4 * B * D * L,
        transcendentals=0,
        bytes_accessed=2 * B * D * in_itemsize + 2 * L * D * 4 + L * B * 4,
    )

    out = pl.pallas_call(
        _folded_kernel,
        out_shape=jax.ShapeDtypeStruct((L, B), jnp.float32),
        grid=(nb,),
        in_specs=[
            pl.BlockSpec((TB, D), lambda i: (i, 0)),   # query tile   (pipelined)
            pl.BlockSpec((TB, D), lambda i: (i, 0)),   # product tile (pipelined)
            pl.BlockSpec((L, D), lambda i: (0, 0)),    # folded query weights   (VMEM-resident)
            pl.BlockSpec((L, D), lambda i: (0, 0)),    # folded product weights (VMEM-resident)
        ],
        out_specs=pl.BlockSpec((L, TB), lambda i: (0, i)),   # lane-dense (L, B) output
        compiler_params=pltpu.CompilerParams(
            dimension_semantics=("parallel",),               # batch tiles are independent
            vmem_limit_bytes=vmem_limit),
        cost_estimate=cost,
    )(query_emb, product_emb, wq_row, wp_row)

    # Bias added to the tiny (L, B) result outside the kernel (free vs. the
    # B*D*4-byte input stream; removes one VMEM input block from the pipeline).
    return out + b_eff[:, None]


def query_product_classifier(query_emb, product_emb, w1, b1, w2, b2, *, block_b=2048):
    """Convenience wrapper mirroring QueryProductClassifier.forward (eval mode).

    query_emb, product_emb: [B, D]; w1: [2D, H]; b1: [H]; w2: [H, L]; b2: [L].
    For repeated calls, prefer fold_params(...) once + folded_forward(...).
    Eval mode only: the fold assumes identity dropout and no activation.
    """
    wq_row, wp_row, b_eff = fold_params(w1, b1, w2, b2)
    out = folded_forward(query_emb, product_emb, wq_row, wp_row, b_eff,
                         block_b=block_b)
    logits = out.T                       # [B, L]
    if logits.shape[-1] == 1:            # matches PyTorch .squeeze(-1) with num_labels == 1
        logits = logits[:, 0]
    return logits


if __name__ == "__main__":
    # Module defaults: size_petrained=768 (concat -> 1536), dense_hidden_dim=126,
    # num_dense_layers=1, num_labels=1.  Small demo batch.
    B, D, H, L = 8, 768, 126, 1

    key = jax.random.PRNGKey(0)
    kq, kp, kw1, kb1, kw2, kb2 = jax.random.split(key, 6)

    query_emb = jax.random.normal(kq, (B, D), dtype=jnp.float32)
    product_emb = jax.random.normal(kp, (B, D), dtype=jnp.float32)

    # PyTorch-style uniform(-1/sqrt(fan_in), 1/sqrt(fan_in)) init.
    lim1 = 1.0 / np.sqrt(2 * D)
    w1 = jax.random.uniform(kw1, (2 * D, H), jnp.float32, -lim1, lim1)
    b1 = jax.random.uniform(kb1, (H,), jnp.float32, -lim1, lim1)
    lim2 = 1.0 / np.sqrt(H)
    w2 = jax.random.uniform(kw2, (H, L), jnp.float32, -lim2, lim2)
    b2 = jax.random.uniform(kb2, (L,), jnp.float32, -lim2, lim2)

    # float64 reference of the exact two-layer module math (eval mode).
    w1_64 = np.asarray(w1, np.float64); b1_64 = np.asarray(b1, np.float64)
    w2_64 = np.asarray(w2, np.float64); b2_64 = np.asarray(b2, np.float64)

    # --- small-batch check (single block, TB == B) ---------------------------
    logits = query_product_classifier(query_emb, product_emb, w1, b1, w2, b2)
    logits = jax.block_until_ready(logits)
    assert logits.shape == (B,)

    q64 = np.asarray(query_emb, np.float64)
    p64 = np.asarray(product_emb, np.float64)
    emb64 = np.concatenate([q64, p64], axis=1)
    ref = ((emb64 @ w1_64 + b1_64) @ w2_64 + b2_64)[:, 0]
    np.testing.assert_allclose(np.asarray(logits), ref, atol=2e-4, rtol=2e-4)

    # --- larger batch exercising the batch grid / pipelining (>=2 tiles) -----
    Bl = 1024
    kq2, kp2 = jax.random.split(jax.random.PRNGKey(1), 2)
    q_l = jax.random.normal(kq2, (Bl, D), dtype=jnp.float32)
    p_l = jax.random.normal(kp2, (Bl, D), dtype=jnp.float32)

    wq_row, wp_row, b_eff = fold_params(w1, b1, w2, b2)   # fold once, reuse
    out_l = folded_forward(q_l, p_l, wq_row, wp_row, b_eff, block_b=2048)
    out_l = jax.block_until_ready(out_l)

    emb_l = np.concatenate([np.asarray(q_l, np.float64),
                            np.asarray(p_l, np.float64)], axis=1)
    ref_l = ((emb_l @ w1_64 + b1_64) @ w2_64 + b2_64)[:, 0]
    np.testing.assert_allclose(np.asarray(out_l[0]), ref_l, atol=2e-4, rtol=2e-4)

    # --- optional bf16 embedding path (halves HBM traffic; looser tolerance) -
    out_bf = folded_forward(q_l.astype(jnp.bfloat16), p_l.astype(jnp.bfloat16),
                            wq_row, wp_row, b_eff, block_b=2048)
    out_bf = jax.block_until_ready(out_bf)
    np.testing.assert_allclose(np.asarray(out_bf[0]), ref_l, atol=5e-2, rtol=5e-2)

    print("KERNEL_OK")
</pallas_src>

<mosaic_0001>
module attributes {stable_mosaic.version = 11 : i64} {
  func.func @_folded_kernel(%arg0: i32, %arg1: memref<8x768xf32, #tpu.memory_space<vmem>>, %arg2: memref<8x768xf32, #tpu.memory_space<vmem>>, %arg3: memref<1x768xf32, #tpu.memory_space<vmem>>, %arg4: memref<1x768xf32, #tpu.memory_space<vmem>>, %arg5: memref<1x8xf32, #tpu.memory_space<vmem>>) attributes {dimension_semantics = [#tpu.dimension_semantics<parallel>], iteration_bounds = array<i64: 1>, scalar_prefetch = 0 : i64, scratch_operands = 0 : i64, tpu.core_type = #tpu.core_type<tc>, window_params = [{transform_indices = @transform_0, window_bounds = array<i64: 8, 768>}, {transform_indices = @transform_1, window_bounds = array<i64: 8, 768>}, {pipeline_mode = #tpu.pipeline_mode<synchronous>, transform_indices = @transform_2, window_bounds = array<i64: 1, 768>}, {pipeline_mode = #tpu.pipeline_mode<synchronous>, transform_indices = @transform_3, window_bounds = array<i64: 1, 768>}, {transform_indices = @transform_4, window_bounds = array<i64: 1, 8>}]} {
    %c0 = arith.constant 0 : index
    %c0_0 = arith.constant 0 : index
    %0 = vector.load %arg1[%c0, %c0_0] : memref<8x768xf32, #tpu.memory_space<vmem>>, vector<8x768xf32>
    %c0_1 = arith.constant 0 : index
    %c0_2 = arith.constant 0 : index
    %1 = vector.load %arg2[%c0_1, %c0_2] : memref<8x768xf32, #tpu.memory_space<vmem>>, vector<8x768xf32>
    %c0_3 = arith.constant 0 : index
    %c0_4 = arith.constant 0 : index
    %2 = vector.load %arg3[%c0_3, %c0_4] : memref<1x768xf32, #tpu.memory_space<vmem>>, vector<1x768xf32>
    %cst = arith.constant dense<0.000000e+00> : vector<1x8xf32>
    %3 = tpu.matmul %2, %0, %cst {dimension_numbers = #tpu.dot_dimension_numbers<[1], [1], [0], [0], [0, 0, 1, 0], [], []>} : vector<1x768xf32>, vector<8x768xf32>, vector<1x8xf32> -> vector<1x8xf32>
    %c0_5 = arith.constant 0 : index
    %c0_6 = arith.constant 0 : index
    %4 = vector.load %arg4[%c0_5, %c0_6] : memref<1x768xf32, #tpu.memory_space<vmem>>, vector<1x768xf32>
    %cst_7 = arith.constant dense<0.000000e+00> : vector<1x8xf32>
    %5 = tpu.matmul %4, %1, %cst_7 {dimension_numbers = #tpu.dot_dimension_numbers<[1], [1], [0], [0], [0, 0, 1, 0], [], []>} : vector<1x768xf32>, vector<8x768xf32>, vector<1x8xf32> -> vector<1x8xf32>
    %6 = arith.addf %3, %5 : vector<1x8xf32>
    %c0_8 = arith.constant 0 : index
    %c0_9 = arith.constant 0 : index
    %7 = vector.load %arg5[%c0_8, %c0_9] : memref<1x8xf32, #tpu.memory_space<vmem>>, vector<1x8xf32>
    tpu.vector_store %arg5[%c0_8, %c0_9], %6 {strides = array<i32>} : memref<1x8xf32, #tpu.memory_space<vmem>>, vector<1x8xf32>,
    return
  }
  func.func @transform_0(%arg0: i32) -> (i32, i32) {
    %c0_i32 = arith.constant 0 : i32
    %c0_i32_0 = arith.constant 0 : i32
    return %arg0, %c0_i32 : i32, i32
  }
  func.func @transform_1(%arg0: i32) -> (i32, i32) {
    %c0_i32 = arith.constant 0 : i32
    %c0_i32_0 = arith.constant 0 : i32
    return %arg0, %c0_i32 : i32, i32
  }
  func.func @transform_2(%arg0: i32) -> (i32, i32) {
    %c0_i32 = arith.constant 0 : i32
    %c0_i32_0 = arith.constant 0 : i32
    %c0_i32_1 = arith.constant 0 : i32
    return %c0_i32, %c0_i32_0 : i32, i32
  }
  func.func @transform_3(%arg0: i32) -> (i32, i32) {
    %c0_i32 = arith.constant 0 : i32
    %c0_i32_0 = arith.constant 0 : i32
    %c0_i32_1 = arith.constant 0 : i32
    return %c0_i32, %c0_i32_0 : i32, i32
  }
  func.func @transform_4(%arg0: i32) -> (i32, i32) {
    %c0_i32 = arith.constant 0 : i32
    %c0_i32_0 = arith.constant 0 : i32
    return %c0_i32, %arg0 : i32, i32
  }
}

</mosaic_0001>

<bundles_post_ra>
// kernel: tpu_custom_call.1
= control target key start
LH: loop header
LB: loop body
LE: loop exit
PB: predicated region body
PF: predicated region fallthrough
CT: control target
= control target key end

     0   :  { %9 = vsyncpa [#allocation3], 0  ;;  %s738_s0 = inlined_call_operand.hbm [shape: f32[8,768], index: 0, kind: input, shape index: {}]   ;;  %s739_s1 = inlined_call_operand.hbm [shape: f32[8,768], index: 1, kind: input, shape index: {}]   ;;  %s740_s2 = inlined_call_operand.hbm [shape: f32[1,768], index: 2, kind: input, shape index: {}]   ;;  %s741_s3 = inlined_call_operand.hbm [shape: f32[1,768], index: 3, kind: input, shape index: {}]   ;;  %s742_s4 = inlined_call_operand.hbm [shape: f32[1,8], index: 4, kind: output, shape index: {}]  }
   0x1   :  { %10 = vsyncpa [#allocation6], 0 }
   0x2   :  { %11 = vsyncpa [#allocation9], 0 }
   0x3   :  { %12 = vsyncpa [#allocation4], 0  ;;  %s693_s15 = smov [#allocation5]   ;;  %s694_s17 = smov [#allocation2]  }
   0x4   :  { %s29_s16 = sshll.u32 %s693_s15, 4  ;;  %s19_s18 = sshll.u32 %s694_s17, 4  ;;  %s30_s16 = int_to_ptr.vmem [resolvable:$true] %s29_s16  ;;  %s20_s18 = int_to_ptr.vmem [resolvable:$true] %s19_s18 }
   0x5   :  { %s593_s19 = scalar_lea.vmem %s30_s16, 768  ;;  %p598_p1 = scmp.lt.s32.totalorder %s30_s16, %s30_s16 }
   0x6   :  { %p594_p0 = scmp.ne.s32.totalorder %s30_s16, %s593_s19  ;;  %p599_p2 = scmp.lt.s32.totalorder %s593_s19, %s593_s19 }
   0x8   :  { %p600_p3 = por %p599_p2, %p598_p1 }
   0xa   :  { %p601_p4 = pnand %p600_p3, %p594_p0 }
   0xc   :  { %604 = shalt.err (!%p601_p4)
}
   0xd   :  { %32 = dma.hbm_to_vmem [thread:$0]  %s739_s1, 768, %s30_s16, [#allocation6]  }
   0xe   :  { %s613_s22 = scalar_lea.vmem %s20_s18, 768  ;;  %p618_p6 = scmp.lt.s32.totalorder %s20_s18, %s20_s18 }
   0xf   :  { %p614_p5 = scmp.ne.s32.totalorder %s20_s18, %s613_s22  ;;  %p619_p7 = scmp.lt.s32.totalorder %s613_s22, %s613_s22 }
  0x11   :  { %p620_p8 = por %p619_p7, %p618_p6 }
  0x13   :  { %p621_p9 = pnand %p620_p8, %p614_p5 }
  0x15   :  { %624 = shalt.err (!%p621_p9)
}
  0x16   :  { %22 = dma.hbm_to_vmem [thread:$0]  %s738_s0, 768, %s20_s18, [#allocation3]  }
  0x17   :  { %s695_s25 = smov [#allocation7]   ;;  %s696_s27 = smov [#allocation8]  }
  0x18   :  { %s39_s26 = sshll.u32 %s695_s25, 4  ;;  %s49_s28 = sshll.u32 %s696_s27, 4  ;;  %s40_s26 = int_to_ptr.vmem [resolvable:$true] %s39_s26  ;;  %s50_s28 = int_to_ptr.vmem [resolvable:$true] %s49_s28 }
  0x19   :  { %s633_s29 = scalar_lea.vmem %s40_s26, 96  ;;  %p638_p11 = scmp.lt.s32.totalorder %s40_s26, %s40_s26 }
  0x1a   :  { %p634_p10 = scmp.ne.s32.totalorder %s40_s26, %s633_s29  ;;  %p639_p12 = scmp.lt.s32.totalorder %s633_s29, %s633_s29 }
  0x1c   :  { %p640_p13 = por %p639_p12, %p638_p11 }
  0x1e   :  { %p641_p0 = pnand %p640_p13, %p634_p10 }
  0x20   :  { %644 = shalt.err (!%p641_p0)
}
  0x21   :  { %42 = dma.hbm_to_vmem [thread:$0]  %s740_s2, 96, %s40_s26, [#allocation6]  }
  0x22   :  { %s653_s5 = scalar_lea.vmem %s50_s28, 96  ;;  %p658_p2 = scmp.lt.s32.totalorder %s50_s28, %s50_s28 }
  0x23   :  { %p654_p1 = scmp.ne.s32.totalorder %s50_s28, %s653_s5  ;;  %p659_p3 = scmp.lt.s32.totalorder %s653_s5, %s653_s5 }
  0x25   :  { %p660_p4 = por %p659_p3, %p658_p2 }
  0x27   :  { %p661_p5 = pnand %p660_p4, %p654_p1 }
  0x29   :  { %664 = shalt.err (!%p661_p5)
}
  0x2a   :  { %52 = dma.hbm_to_vmem [thread:$0]  %s741_s3, 96, %s50_s28, [#allocation9]  }
  0x2b   :  { %685 = dma.done.wait [#allocation3], 768  }
  0x2c   :  { %686 = vsyncadd [#allocation3], 4294966528 }
  0x2d   :  { %687 = dma.done.wait [#allocation6], 864  }
  0x2e   :  { %688 = vsyncadd [#allocation6], 4294966432 }
  0x2f   :  { %689 = dma.done.wait [#allocation9], 96  }
  0x30   :  { %690 = vsyncadd [#allocation9], 4294967200  ;;  %v80_v0 = vlaneseq  ;;  %v72_v7 = vld [vmem:[#allocation5 + $0x8] sm:$0xff]  ;;  %v71_v8 = vld [vmem:[#allocation5] sm:$0xff]  ;;  %s697_s2 = smov [#allocation10]   ;;  %vm561_vm0 = vcmask 57344  }
  0x31   :  { %v74_v9 = vld [vmem:[#allocation5 + $0x18] sm:$0xff]  ;;  %140 = vmatprep.subr.mxu0 %v72_v7  ;;  %v73_v10 = vld [vmem:[#allocation5 + $0x10] sm:$0xff]  ;;  %v76_v12 = vld [vmem:[#allocation5 + $0x28] sm:$0xff]  ;;  %s569_s3 = sshll.u32 %s697_s2, 4  ;;  %s570_s3 = int_to_ptr.vmem [resolvable:$true] %s569_s3 }
  0x32   :  { %v81_v1 = vshrl.u32 %v80_v0, 7  ;;  %210 = vmatprep.subr.mxu1 %v74_v9  ;;  %v78_v11 = vld [vmem:[#allocation8] sm:$0x3f]  ;;  %141 = vmatpush1.xpose.msra.mxu0 %v71_v8  ;;  %v75_v19 = vld [vmem:[#allocation5 + $0x20] sm:$0xff]  ;;  %v77_v22 = vld [vmem:[#allocation7] sm:$0x3f]  ;;  %p670_p7 = scmp.lt.s32.totalorder %s570_s3, %s570_s3 }
  0x33   :  { %211 = vmatpush1.xpose.msra.mxu1 %v73_v10  ;;  %v66_v17 = vld [vmem:[#allocation2 + $0x8] sm:$0xff]  ;;  %280 = vmatprep.subr.mxu0 %v76_v12  ;;  %v65_v20 = vld [vmem:[#allocation2] sm:$0xff]  ;;  %v68_v25 = vld [vmem:[#allocation2 + $0x18] sm:$0xff]  ;;  %s665_s7 = scalar_lea.vmem %s570_s3, 16  ;;  %s669_s8 = scalar_lea.vmem %s570_s3, 32 }
  0x34   :  { %v86_v2 = vsub.s32 1, %v81_v1  ;;  %v82_v3 = vsub.s32 0, %v81_v1  ;;  %v94_v4 = vsub.s32 3, %v81_v1  ;;  %v90_v5 = vsub.s32 2, %v81_v1  ;;  %381 = vmatprep.subr.mxu1 %v66_v17  ;;  %v70_v27 = vld [vmem:[#allocation2 + $0x28] sm:$0xff]  ;;  %v67_v28 = vld [vmem:[#allocation2 + $0x10] sm:$0xff]  ;;  %p666_p6 = scmp.ne.s32.totalorder %s570_s3, %s665_s7  ;;  %p671_p8 = scmp.lt.s32.totalorder %s669_s8, %s665_s7 }
  0x35   :  { %v102_v6 = vsub.s32 5, %v81_v1  ;;  %v98_v13 = vsub.s32 4, %v81_v1  ;;  %v69_v29 = vld [vmem:[#allocation2 + $0x20] sm:$0xff] }
  0x36   :  { %v87_v14 = vrot.slane %v78_v11, %v86_v2  ;;  %v83_v15 = vrot.slane %v78_v11, %v82_v3  ;;  %v95_v16 = vrot.slane %v78_v11, %v94_v4  ;;  %v91_v18 = vrot.slane %v78_v11, %v90_v5  ;;  %p672_p9 = por %p671_p8, %p670_p7 }
  0x37   :  { %v103_v21 = vrot.slane %v78_v11, %v102_v6  ;;  %v328_v23 = vrot.slane %v77_v22, %v86_v2  ;;  %v99_v24 = vrot.slane %v78_v11, %v98_v13  ;;  %v324_v26 = vrot.slane %v77_v22, %v82_v3 }
  0x38   :  { %174 = vmatprep.mubr.f32.mxu0 %v87_v14  ;;  %244 = vmatprep.mubr.f32.mxu1 %v95_v16  ;;  %v336_v30 = vrot.slane %v77_v22, %v94_v4  ;;  %v344_v31 = vrot.slane %v77_v22, %v102_v6  ;;  %v332_v32 = vrot.slane %v77_v22, %v90_v5  ;;  %p673_p10 = pnand %p672_p9, %p666_p6 }
  0x39   :  { %175 = vmatmul.mubr.f32.vlgmr.msra.gmra.mxu0 %v83_v15  ;;  %245 = vmatmul.mubr.f32.vlgmr.msra.gmra.mxu1 %v91_v18  ;;  %v340_v33 = vrot.slane %v77_v22, %v98_v13 }
  0x3a   :  { %281 = vmatpush1.xpose.msra.mxu0 %v75_v19  ;;  %382 = vmatpush1.xpose.msra.mxu1 %v65_v20 }
  0x3b   :  { %314 = vmatprep.mubr.f32.mxu0 %v103_v21  ;;  %415 = vmatprep.mubr.f32.mxu1 %v328_v23 }
  0x3c   :  { %451 = vmatprep.subr.mxu0 %v68_v25  ;;  %521 = vmatprep.subr.mxu1 %v70_v27 }
  0x3d   :  { %315 = vmatmul.mubr.f32.vlgmr.msra.gmra.mxu0 %v99_v24  ;;  %416 = vmatmul.mubr.f32.vlgmr.msra.gmra.mxu1 %v324_v26 }
  0x3e   :  { %452 = vmatpush1.xpose.msra.mxu0 %v67_v28  ;;  %522 = vmatpush1.xpose.msra.mxu1 %v69_v29 }
  0x3f   :  { %485 = vmatprep.mubr.f32.mxu0 %v336_v30  ;;  %555 = vmatprep.mubr.f32.mxu1 %v344_v31 }
  0x41   :  { %486 = vmatmul.mubr.f32.vlgmr.msra.gmra.mxu0 %v332_v32  ;;  %556 = vmatmul.mubr.f32.vlgmr.msra.gmra.mxu1 %v340_v33 }
  0xf9   :  { %v176_v34 = vpop.f32.mrf.mxu0  ;;  %v246_v35 = vpop.f32.mrf.mxu1 }
  0xfa   :  { %v247_v38 = vadd.f32 %v246_v35, %v176_v34 }
  0xfb   :  { %v178_v36 = vpop.f32.mrf.mxu0  ;;  %v248_v37 = vpop.f32.mrf.mxu1 }
  0xfd   :  { %v316_v39 = vpop.f32.mrf.mxu0  ;;  %v417_v40 = vpop.f32.mrf.mxu1 }
  0xfe   :  { %v317_v41 = vadd.f32 %v316_v39, %v247_v38 }
  0xff   :  { %v318_v42 = vpop.f32.mrf.mxu0  ;;  %v419_v43 = vpop.f32.mrf.mxu1 }
 0x100   :  { %v418_v44 = vadd.f32 %v417_v40, %v317_v41 }
 0x101   :  { %v487_v45 = vpop.f32.mrf.mxu0  ;;  %v557_v46 = vpop.f32.mrf.mxu1 }
 0x102   :  { %v488_v47 = vadd.f32 %v487_v45, %v418_v44 }
 0x103   :  { %v489_v48 = vpop.f32.mrf.mxu0  ;;  %v559_v49 = vpop.f32.mrf.mxu1 }
 0x104   :  { %v558_v50 = vadd.f32 %v557_v46, %v488_v47 }
 0x106   :  { %562 = vst.msk [vmem:[#allocation10] sm:$0x1] %vm561_vm0, %v558_v50 }
 0x107   :  { %676 = shalt.err (!%p673_p10)
}
 0x108   :  { %572 = dma.vmem_to_hbm [thread:$0]  %s570_s3, 16, %s742_s4, [#allocation4]  }
 0x109   :  { %691 = dma.done.wait [#allocation4], 16  }
 0x10a   :  { %692 = vsyncadd [#allocation4], 4294967280 }
 0x10b   :  { %576 = vsyncpa [#allocation3], 1 }
 0x10c   :  { %577 = vsyncpa [#allocation6], 1 }
 0x10d   :  { %578 = vsyncpa [#allocation9], 1 }
 0x10e   :  { %579 = vsyncpa [#allocation4], 1 }

</bundles_post_ra>
